<compile_context>
chip_gen: v7x
topology: tpu7x:2x2x1
jax: 0.10.0
libtpu: 0.0.40
codegen_flags: <defaults>
</compile_context>

<pallas_src>
import functools

import jax
import jax.numpy as jnp
from jax import lax
from jax.experimental import pallas as pl
from jax.experimental.pallas import tpu as pltpu

MIN_LOG_STD = -20.0
MAX_LOG_STD = 2.0


def _round_up(n: int, m: int) -> int:
    return ((n + m - 1) // m) * m


def actor_kernel(action_dim, x_ref, w1_ref, b1_ref, w2_ref, b2_ref,
                 wh_ref, bh_ref, out_ref):
    """One batch tile: fc1 -> relu -> fc2 -> relu -> fused head -> masked clamp."""
    mm_dtype = w1_ref.dtype  # bf16 or f32 matmul operands; accumulation always f32.

    x = x_ref[...].astype(mm_dtype)

    # fc1 + ReLU  (elementwise math stays in f32)
    h1 = jnp.dot(x, w1_ref[...], preferred_element_type=jnp.float32) + b1_ref[...]
    h1 = jnp.maximum(h1, 0.0)

    # fc2 + ReLU
    h2 = jnp.dot(h1.astype(mm_dtype), w2_ref[...],
                 preferred_element_type=jnp.float32) + b2_ref[...]
    h2 = jnp.maximum(h2, 0.0)

    # Fused head: [mu || log_std || zero-pad] in one matmul, one bias add.
    head = jnp.dot(h2.astype(mm_dtype), wh_ref[...],
                   preferred_element_type=jnp.float32) + bh_ref[...]

    # Clamp only lanes >= action_dim (the log_std half). The zero-padded lanes
    # also pass through the clamp but clip(0) == 0, so they stay zero.
    lane = lax.broadcasted_iota(jnp.int32, head.shape, dimension=1)
    out = jnp.where(lane >= action_dim,
                    jnp.clip(head, MIN_LOG_STD, MAX_LOG_STD),
                    head)

    out_ref[...] = out.astype(out_ref.dtype)


def actor_forward(x, params, action_dim, *, block_b: int = 512):
    """x: [B, state_dim] float32. Returns (mu, log_std), each [B, action_dim] f32."""
    B, state_dim = x.shape
    head_pad = params["wh"].shape[1]  # lane-padded fused-head width (multiple of 128)

    # Batch tile: at least 8 sublanes, at most block_b rows; pad B up to a multiple.
    tb = min(block_b, _round_up(B, 8))
    b_pad = _round_up(B, tb)
    if b_pad != B:
        x = jnp.pad(x, ((0, b_pad - B), (0, 0)))

    grid = (b_pad // tb,)

    def _tiled(shape):            # tiled over the batch grid axis
        return pl.BlockSpec(shape, lambda i: (i, 0))

    def _resident(arr):           # constant block index -> stays resident in VMEM
        return pl.BlockSpec(arr.shape, lambda i: (0, 0))

    in_specs = [
        _tiled((tb, state_dim)),      # x
        _resident(params["w1"]), _resident(params["b1"]),
        _resident(params["w2"]), _resident(params["b2"]),
        _resident(params["wh"]), _resident(params["bh"]),
    ]
    out_specs = _tiled((tb, head_pad))

    packed = pl.pallas_call(
        functools.partial(actor_kernel, action_dim),
        out_shape=jax.ShapeDtypeStruct((b_pad, head_pad), jnp.float32),
        grid=grid,
        in_specs=in_specs,
        out_specs=out_specs,
        compiler_params=pltpu.CompilerParams(
            dimension_semantics=("parallel",)),  # shard batch tiles across TCs (v7x)
    )(x, params["w1"], params["b1"], params["w2"], params["b2"],
      params["wh"], params["bh"])

    mu = packed[:B, :action_dim]
    log_std = packed[:B, action_dim:2 * action_dim]
    return mu, log_std


def init_params(key, state_dim, action_dim, hidden=256, param_dtype=jnp.float32):
    """Deterministic synthetic init (PyTorch-Linear-like fan_in uniform).

    The two heads are pre-fused and lane-padded:
      wh = [wmu || wls || 0-pad]  (shape [hidden, round_up(2*action_dim, 128)])
      bh = [bmu || bls || 0-pad]
    Weights are stored in `param_dtype` (f32 or bf16); biases stay f32 since
    they are added to the f32 accumulator.
    """
    ks = jax.random.split(key, 8)

    def lin(kw, kb, fan_in, fan_out):
        bound = 1.0 / jnp.sqrt(fan_in)
        w = jax.random.uniform(kw, (fan_in, fan_out), jnp.float32, -bound, bound)
        b = jax.random.uniform(kb, (1, fan_out), jnp.float32, -bound, bound)
        return w, b

    w1, b1 = lin(ks[0], ks[1], state_dim, hidden)
    w2, b2 = lin(ks[2], ks[3], hidden, hidden)
    wmu, bmu = lin(ks[4], ks[5], hidden, action_dim)
    wls, bls = lin(ks[6], ks[7], hidden, action_dim)

    head_pad = _round_up(2 * action_dim, 128)
    pad_cols = head_pad - 2 * action_dim
    wh = jnp.concatenate(
        [wmu, wls, jnp.zeros((hidden, pad_cols), jnp.float32)], axis=1)
    bh = jnp.concatenate(
        [bmu, bls, jnp.zeros((1, pad_cols), jnp.float32)], axis=1)

    return {
        "w1": w1.astype(param_dtype), "b1": b1,
        "w2": w2.astype(param_dtype), "b2": b2,
        "wh": wh.astype(param_dtype), "bh": bh,
    }


def actor_reference(x, p, action_dim):
    """Pure-JAX reference (f32 math, weights cast back to f32)."""
    w1 = p["w1"].astype(jnp.float32)
    w2 = p["w2"].astype(jnp.float32)
    wh = p["wh"].astype(jnp.float32)
    h1 = jnp.maximum(x @ w1 + p["b1"], 0.0)
    h2 = jnp.maximum(h1 @ w2 + p["b2"], 0.0)
    head = h2 @ wh + p["bh"]
    mu = head[:, :action_dim]
    ls = jnp.clip(head[:, action_dim:2 * action_dim], MIN_LOG_STD, MAX_LOG_STD)
    return mu, ls


if __name__ == "__main__":
    key = jax.random.PRNGKey(0)
    k_params, k_x, k_x2 = jax.random.split(key, 3)

    batch, state_dim, action_dim = 2, 16, 4

    # --- f32 weights: exact-semantics check at tiny batch (padded to 8 rows) ---
    params_f32 = init_params(k_params, state_dim, action_dim, param_dtype=jnp.float32)
    x = jax.random.normal(k_x, (batch, state_dim), dtype=jnp.float32)

    mu, log_std = actor_forward(x, params_f32, action_dim)
    jax.block_until_ready((mu, log_std))

    mu_ref, ls_ref = actor_reference(x, params_f32, action_dim)
    assert mu.shape == (batch, action_dim) and log_std.shape == (batch, action_dim)
    assert jnp.allclose(mu, mu_ref, atol=1e-4, rtol=1e-4)
    assert jnp.allclose(log_std, ls_ref, atol=1e-4, rtol=1e-4)

    # --- larger, non-aligned batch: exercises batch tiling + padding + parallel grid ---
    big_b = 300
    xb = jax.random.normal(k_x2, (big_b, state_dim), dtype=jnp.float32)
    mu_b, ls_b = actor_forward(xb, params_f32, action_dim, block_b=128)  # 3 batch tiles
    jax.block_until_ready((mu_b, ls_b))
    mu_b_ref, ls_b_ref = actor_reference(xb, params_f32, action_dim)
    assert jnp.allclose(mu_b, mu_b_ref, atol=1e-4, rtol=1e-4)
    assert jnp.allclose(ls_b, ls_b_ref, atol=1e-4, rtol=1e-4)

    # --- bf16 weights: halved weight DMA bytes, bf16 MXU operands, f32 accumulate ---
    params_bf16 = init_params(k_params, state_dim, action_dim, param_dtype=jnp.bfloat16)
    mu16, ls16 = actor_forward(xb, params_bf16, action_dim, block_b=128)
    jax.block_until_ready((mu16, ls16))
    mu16_ref, ls16_ref = actor_reference(xb, params_bf16, action_dim)
    assert jnp.allclose(mu16, mu16_ref, atol=1e-1, rtol=1e-1)
    assert jnp.allclose(ls16, ls16_ref, atol=1e-1, rtol=1e-1)

    print("KERNEL_OK")
</pallas_src>

<mosaic_0001>
module attributes {stable_mosaic.version = 11 : i64} {
  func.func @actor_kernel(%arg0: i32, %arg1: memref<8x16xf32, #tpu.memory_space<vmem>>, %arg2: memref<16x256xf32, #tpu.memory_space<vmem>>, %arg3: memref<1x256xf32, #tpu.memory_space<vmem>>, %arg4: memref<256x256xf32, #tpu.memory_space<vmem>>, %arg5: memref<1x256xf32, #tpu.memory_space<vmem>>, %arg6: memref<256x128xf32, #tpu.memory_space<vmem>>, %arg7: memref<1x128xf32, #tpu.memory_space<vmem>>, %arg8: memref<8x128xf32, #tpu.memory_space<vmem>>) attributes {dimension_semantics = [#tpu.dimension_semantics<parallel>], iteration_bounds = array<i64: 1>, scalar_prefetch = 0 : i64, scratch_operands = 0 : i64, tpu.core_type = #tpu.core_type<tc>, window_params = [{transform_indices = @transform_0, window_bounds = array<i64: 8, 16>}, {pipeline_mode = #tpu.pipeline_mode<synchronous>, transform_indices = @transform_1, window_bounds = array<i64: 16, 256>}, {pipeline_mode = #tpu.pipeline_mode<synchronous>, transform_indices = @transform_2, window_bounds = array<i64: 1, 256>}, {pipeline_mode = #tpu.pipeline_mode<synchronous>, transform_indices = @transform_3, window_bounds = array<i64: 256, 256>}, {pipeline_mode = #tpu.pipeline_mode<synchronous>, transform_indices = @transform_4, window_bounds = array<i64: 1, 256>}, {pipeline_mode = #tpu.pipeline_mode<synchronous>, transform_indices = @transform_5, window_bounds = array<i64: 256, 128>}, {pipeline_mode = #tpu.pipeline_mode<synchronous>, transform_indices = @transform_6, window_bounds = array<i64: 1, 128>}, {transform_indices = @transform_7, window_bounds = array<i64: 8, 128>}]} {
    %c0 = arith.constant 0 : index
    %c0_0 = arith.constant 0 : index
    %0 = vector.load %arg1[%c0, %c0_0] : memref<8x16xf32, #tpu.memory_space<vmem>>, vector<8x16xf32>
    %c0_1 = arith.constant 0 : index
    %c0_2 = arith.constant 0 : index
    %1 = vector.load %arg2[%c0_1, %c0_2] : memref<16x256xf32, #tpu.memory_space<vmem>>, vector<16x256xf32>
    %cst = arith.constant dense<0.000000e+00> : vector<8x256xf32>
    %2 = tpu.matmul %0, %1, %cst {dimension_numbers = #tpu.dot_dimension_numbers<[1], [0], [0], [1], [0, 0, 1, 1], [], []>} : vector<8x16xf32>, vector<16x256xf32>, vector<8x256xf32> -> vector<8x256xf32>
    %c0_3 = arith.constant 0 : index
    %c0_4 = arith.constant 0 : index
    %3 = vector.load %arg3[%c0_3, %c0_4] : memref<1x256xf32, #tpu.memory_space<vmem>>, vector<1x256xf32>
    %4 = vector.broadcast %3 : vector<1x256xf32> to vector<8x256xf32>
    %5 = arith.addf %2, %4 : vector<8x256xf32>
    %cst_5 = arith.constant 0.000000e+00 : f32
    %6 = vector.broadcast %cst_5 : f32 to vector<8x256xf32>
    %7 = arith.maximumf %5, %6 : vector<8x256xf32>
    %c0_6 = arith.constant 0 : index
    %c0_7 = arith.constant 0 : index
    %8 = vector.load %arg4[%c0_6, %c0_7] : memref<256x256xf32, #tpu.memory_space<vmem>>, vector<256x256xf32>
    %cst_8 = arith.constant dense<0.000000e+00> : vector<8x256xf32>
    %9 = tpu.matmul %7, %8, %cst_8 {dimension_numbers = #tpu.dot_dimension_numbers<[1], [0], [0], [1], [0, 0, 1, 1], [], []>} : vector<8x256xf32>, vector<256x256xf32>, vector<8x256xf32> -> vector<8x256xf32>
    %c0_9 = arith.constant 0 : index
    %c0_10 = arith.constant 0 : index
    %10 = vector.load %arg5[%c0_9, %c0_10] : memref<1x256xf32, #tpu.memory_space<vmem>>, vector<1x256xf32>
    %11 = vector.broadcast %10 : vector<1x256xf32> to vector<8x256xf32>
    %12 = arith.addf %9, %11 : vector<8x256xf32>
    %cst_11 = arith.constant 0.000000e+00 : f32
    %13 = vector.broadcast %cst_11 : f32 to vector<8x256xf32>
    %14 = arith.maximumf %12, %13 : vector<8x256xf32>
    %c0_12 = arith.constant 0 : index
    %c0_13 = arith.constant 0 : index
    %15 = vector.load %arg6[%c0_12, %c0_13] : memref<256x128xf32, #tpu.memory_space<vmem>>, vector<256x128xf32>
    %cst_14 = arith.constant dense<0.000000e+00> : vector<8x128xf32>
    %16 = tpu.matmul %14, %15, %cst_14 {dimension_numbers = #tpu.dot_dimension_numbers<[1], [0], [0], [1], [0, 0, 1, 1], [], []>} : vector<8x256xf32>, vector<256x128xf32>, vector<8x128xf32> -> vector<8x128xf32>
    %c0_15 = arith.constant 0 : index
    %c0_16 = arith.constant 0 : index
    %17 = vector.load %arg7[%c0_15, %c0_16] : memref<1x128xf32, #tpu.memory_space<vmem>>, vector<1x128xf32>
    %18 = vector.broadcast %17 : vector<1x128xf32> to vector<8x128xf32>
    %19 = arith.addf %16, %18 : vector<8x128xf32>
    %20 = tpu.iota {dimensions = array<i32: 1>} : vector<8x128xi32>
    %c4_i32 = arith.constant 4 : i32
    %21 = vector.broadcast %c4_i32 : i32 to vector<8x128xi32>
    %22 = arith.cmpi sge, %20, %21 : vector<8x128xi32>
    %cst_17 = arith.constant -2.000000e+01 : f32
    %cst_18 = arith.constant 2.000000e+00 : f32
    %23 = vector.broadcast %cst_17 : f32 to vector<8x128xf32>
    %24 = arith.maximumf %23, %19 : vector<8x128xf32>
    %25 = vector.broadcast %cst_18 : f32 to vector<8x128xf32>
    %26 = arith.minimumf %25, %24 : vector<8x128xf32>
    %27 = arith.select %22, %26, %19 : vector<8x128xi1>, vector<8x128xf32>
    %c0_19 = arith.constant 0 : index
    %c0_20 = arith.constant 0 : index
    %28 = vector.load %arg8[%c0_19, %c0_20] : memref<8x128xf32, #tpu.memory_space<vmem>>, vector<8x128xf32>
    tpu.vector_store %arg8[%c0_19, %c0_20], %27 {strides = array<i32>} : memref<8x128xf32, #tpu.memory_space<vmem>>, vector<8x128xf32>,
    return
  }
  func.func @transform_0(%arg0: i32) -> (i32, i32) {
    %c0_i32 = arith.constant 0 : i32
    %c0_i32_0 = arith.constant 0 : i32
    return %arg0, %c0_i32 : i32, i32
  }
  func.func @transform_1(%arg0: i32) -> (i32, i32) {
    %c0_i32 = arith.constant 0 : i32
    %c0_i32_0 = arith.constant 0 : i32
    %c0_i32_1 = arith.constant 0 : i32
    return %c0_i32, %c0_i32_0 : i32, i32
  }
  func.func @transform_2(%arg0: i32) -> (i32, i32) {
    %c0_i32 = arith.constant 0 : i32
    %c0_i32_0 = arith.constant 0 : i32
    %c0_i32_1 = arith.constant 0 : i32
    return %c0_i32, %c0_i32_0 : i32, i32
  }
  func.func @transform_3(%arg0: i32) -> (i32, i32) {
    %c0_i32 = arith.constant 0 : i32
    %c0_i32_0 = arith.constant 0 : i32
    %c0_i32_1 = arith.constant 0 : i32
    return %c0_i32, %c0_i32_0 : i32, i32
  }
  func.func @transform_4(%arg0: i32) -> (i32, i32) {
    %c0_i32 = arith.constant 0 : i32
    %c0_i32_0 = arith.constant 0 : i32
    %c0_i32_1 = arith.constant 0 : i32
    return %c0_i32, %c0_i32_0 : i32, i32
  }
  func.func @transform_5(%arg0: i32) -> (i32, i32) {
    %c0_i32 = arith.constant 0 : i32
    %c0_i32_0 = arith.constant 0 : i32
    %c0_i32_1 = arith.constant 0 : i32
    return %c0_i32, %c0_i32_0 : i32, i32
  }
  func.func @transform_6(%arg0: i32) -> (i32, i32) {
    %c0_i32 = arith.constant 0 : i32
    %c0_i32_0 = arith.constant 0 : i32
    %c0_i32_1 = arith.constant 0 : i32
    return %c0_i32, %c0_i32_0 : i32, i32
  }
  func.func @transform_7(%arg0: i32) -> (i32, i32) {
    %c0_i32 = arith.constant 0 : i32
    %c0_i32_0 = arith.constant 0 : i32
    return %arg0, %c0_i32 : i32, i32
  }
}

</mosaic_0001>

<bundles_post_ra>
// kernel: tpu_custom_call.1
= control target key start
LH: loop header
LB: loop body
LE: loop exit
PB: predicated region body
PF: predicated region fallthrough
CT: control target
= control target key end

     0   :  { %12 = vsyncpa [#allocation3], 0  ;;  %s846_s0 = inlined_call_operand.hbm [shape: f32[8,16], index: 0, kind: input, shape index: {}]   ;;  %s847_s1 = inlined_call_operand.hbm [shape: f32[16,256], index: 1, kind: input, shape index: {}]   ;;  %s848_s2 = inlined_call_operand.vmem [shape: f32[1,256], index: 2, kind: input, shape index: {}]   ;;  %s849_s3 = inlined_call_operand.hbm [shape: f32[256,256], index: 3, kind: input, shape index: {}]   ;;  %s850_s4 = inlined_call_operand.vmem [shape: f32[1,256], index: 4, kind: input, shape index: {}]   ;;  %s851_s5 = inlined_call_operand.hbm [shape: f32[256,128], index: 5, kind: input, shape index: {}]   ;;  %s852_s6 = inlined_call_operand.vmem [shape: f32[1,128], index: 6, kind: input, shape index: {}]   ;;  %s853_s7 = inlined_call_operand.hbm [shape: f32[8,128], index: 7, kind: output, shape index: {}]  }
   0x1   :  { %13 = vsyncpa [#allocation6], 0 }
   0x2   :  { %14 = vsyncpa [#allocation9], 0 }
   0x3   :  { %15 = vsyncpa [#allocation4], 0  ;;  %s721_s24 = smov [#allocation5]   ;;  %s603_s28 = scalar_lea.hbm %s847_s1, 512 }
   0x4   :  { %s31_s25 = sshll.u32 %s721_s24, 4  ;;  %p604_p0 = scmp.ne.s32.totalorder %s847_s1, %s603_s28  ;;  %s32_s25 = int_to_ptr.vmem [resolvable:$true] %s31_s25 }
   0x5   :  { %p607_p1 = scmp.lt.u32.totalorder %s603_s28, %s847_s1 }
   0x7   :  { %p609_p2 = pnand %p607_p1, %p604_p0 }
   0x9   :  { %612 = shalt.err (!%p609_p2)
}
   0xa   :  { %s613_s10 = scalar_lea.vmem %s32_s25, 512  ;;  %p618_p4 = scmp.lt.s32.totalorder %s32_s25, %s32_s25 }
   0xb   :  { %p614_p3 = scmp.ne.s32.totalorder %s32_s25, %s613_s10  ;;  %p619_p5 = scmp.lt.s32.totalorder %s613_s10, %s613_s10 }
   0xd   :  { %p620_p6 = por %p619_p5, %p618_p4 }
   0xf   :  { %p621_p7 = pnand %p620_p6, %p614_p3 }
  0x11   :  { %624 = shalt.err (!%p621_p7)
}
  0x12   :  { %s722_s11 = smov 256   ;;  %s723_s12 = smov 16  }
  0x13   :  { %37 = dma.hbm_to_vmem [thread:$0]  %s847_s1, 512, %s32_s25, [#allocation6], %s722_s11, %s722_s11, %s723_s12  }
  0x14   :  { %s724_s15 = smov [#allocation2]   ;;  %s725_s17 = smov [#allocation7]  }
  0x15   :  { %s22_s16 = sshll.u32 %s724_s15, 4  ;;  %s45_s18 = sshll.u32 %s725_s17, 4  ;;  %s23_s16 = int_to_ptr.vmem [resolvable:$true] %s22_s16  ;;  %s46_s18 = int_to_ptr.vmem [resolvable:$true] %s45_s18 }
  0x16   :  { %s625_s21 = scalar_lea.hbm %s846_s0, 128 }
  0x17   :  { %p626_p8 = scmp.ne.s32.totalorder %s846_s0, %s625_s21  ;;  %p629_p9 = scmp.lt.u32.totalorder %s625_s21, %s846_s0 }
  0x19   :  { %p631_p10 = pnand %p629_p9, %p626_p8 }
  0x1b   :  { %634 = shalt.err (!%p631_p10)
}
  0x1c   :  { %s635_s1 = scalar_lea.vmem %s23_s16, 128  ;;  %p640_p12 = scmp.lt.s32.totalorder %s23_s16, %s23_s16 }
  0x1d   :  { %p636_p11 = scmp.ne.s32.totalorder %s23_s16, %s635_s1  ;;  %p641_p13 = scmp.lt.s32.totalorder %s635_s1, %s635_s1 }
  0x1f   :  { %p642_p0 = por %p641_p13, %p640_p12 }
  0x21   :  { %p643_p1 = pnand %p642_p0, %p636_p11 }
  0x23   :  { %646 = shalt.err (!%p643_p1)
}
  0x24   :  { %25 = dma.hbm_to_vmem [thread:$0]  %s846_s0, 128, %s23_s16, [#allocation3]  }
  0x25   :  { %s647_s30 = scalar_lea.hbm %s849_s3, 8192 }
  0x26   :  { %p648_p2 = scmp.ne.s32.totalorder %s849_s3, %s647_s30  ;;  %p651_p3 = scmp.lt.u32.totalorder %s647_s30, %s849_s3 }
  0x28   :  { %p653_p4 = pnand %p651_p3, %p648_p2 }
  0x2a   :  { %656 = shalt.err (!%p653_p4)
}
  0x2b   :  { %s657_s14 = scalar_lea.vmem %s46_s18, 8192  ;;  %p662_p6 = scmp.lt.s32.totalorder %s46_s18, %s46_s18 }
  0x2c   :  { %p658_p5 = scmp.ne.s32.totalorder %s46_s18, %s657_s14  ;;  %p663_p7 = scmp.lt.s32.totalorder %s657_s14, %s657_s14 }
  0x2e   :  { %p664_p8 = por %p663_p7, %p662_p6 }
  0x30   :  { %p665_p9 = pnand %p664_p8, %p658_p5 }
  0x32   :  { %668 = shalt.err (!%p665_p9)
}
  0x33   :  { %51 = dma.hbm_to_vmem [thread:$0]  %s849_s3, 8192, %s46_s18, [#allocation6], %s722_s11, %s722_s11, %s723_s12  }
  0x34   :  { %s726_s16 = smov [#allocation8]   ;;  %s669_s21 = scalar_lea.hbm %s851_s5, 4096 }
  0x35   :  { %s59_s17 = sshll.u32 %s726_s16, 4  ;;  %p670_p10 = scmp.ne.s32.totalorder %s851_s5, %s669_s21  ;;  %s60_s17 = int_to_ptr.vmem [resolvable:$true] %s59_s17 }
  0x36   :  { %p673_p11 = scmp.lt.u32.totalorder %s669_s21, %s851_s5 }
  0x38   :  { %p675_p12 = pnand %p673_p11, %p670_p10 }
  0x3a   :  { %678 = shalt.err (!%p675_p12)
}
  0x3b   :  { %s679_s1 = scalar_lea.vmem %s60_s17, 4096  ;;  %p684_p0 = scmp.lt.s32.totalorder %s60_s17, %s60_s17 }
  0x3c   :  { %p680_p13 = scmp.ne.s32.totalorder %s60_s17, %s679_s1  ;;  %p685_p1 = scmp.lt.s32.totalorder %s679_s1, %s679_s1 }
  0x3e   :  { %p686_p2 = por %p685_p1, %p684_p0 }
  0x40   :  { %p687_p3 = pnand %p686_p2, %p680_p13 }
  0x42   :  { %690 = shalt.err (!%p687_p3)
}
  0x43   :  { %s727_s3 = smov 128   ;;  %s728_s11 = smov 8  }
  0x44   :  { %65 = dma.hbm_to_vmem [thread:$0]  %s851_s5, 4096, %s60_s17, [#allocation9], %s727_s3, %s727_s3, %s728_s11  }
  0x45   :  { %713 = dma.done.wait [#allocation3], 128  }
  0x46   :  { %714 = vsyncadd [#allocation3], 4294967168 }
  0x47   :  { %715 = dma.done.wait [#allocation6], 8704  }
  0x48   :  { %716 = vsyncadd [#allocation6], 4294958592 }
  0x49   :  { %717 = dma.done.wait [#allocation9], 4096  }
  0x4a   :  { %718 = vsyncadd [#allocation9], 4294963200  ;;  %v729_v0 = vmov 0.0   ;;  %v82_v1 = vld [vmem:[#allocation5 + $0x8] sm:$0xff]  ;;  %v84_v2 = vld [vmem:[#allocation5 + $0x18] sm:$0xff]  ;;  %vm97_vm0 = vcmask 130048  }
  0x4b   :  { %165 = vmatprep.mubr.f32.mxu0 %v729_v0  ;;  %v81_v3 = vld [vmem:[#allocation5] sm:$0xff]  ;;  %v493_v4 = vpack.c.bf16 %v84_v2, %v82_v1  ;;  %v83_v5 = vld [vmem:[#allocation5 + $0x10] sm:$0xff]  ;;  %v175_v6 = vld [vmem:[#allocation7 + $0x8] sm:$0xff] }
  0x4c   :  { %v495_v7 = vpack.c.bf16 %v83_v5, %v81_v3  ;;  %v80_v8 = vld [vmem:[#allocation2] sm:$0xff]  ;;  %v174_v10 = vld [vmem:[#allocation7] sm:$0xff]  ;;  %v176_v11 = vld [vmem:[#allocation7 + $0x10] sm:$0xff] }
  0x4d   :  { %v177_v9 = vld [vmem:[#allocation7 + $0x18] sm:$0xff]  ;;  %494 = vmatprep.subr.bf16.mxu0 %v493_v4  ;;  %v499_v13 = vpack.c.bf16 %v176_v11, %v174_v10  ;;  %v179_v14 = vld [vmem:[#allocation7 + $0x28] sm:$0xff]  ;;  %v178_v16 = vld [vmem:[#allocation7 + $0x20] sm:$0xff] }
  0x4e   :  { %v497_v12 = vpack.c.bf16 %v177_v9, %v175_v6  ;;  %v181_v15 = vld [vmem:[#allocation7 + $0x38] sm:$0xff]  ;;  %496 = vmatpush1.bf16.msra.mxu0 %v495_v7  ;;  %v180_v18 = vld [vmem:[#allocation7 + $0x30] sm:$0xff]  ;;  %v183_v19 = vld [vmem:[#allocation7 + $0x48] sm:$0xff] }
  0x4f   :  { %v501_v17 = vpack.c.bf16 %v181_v15, %v179_v14  ;;  %v185_v20 = vld [vmem:[#allocation7 + $0x58] sm:$0xff]  ;;  %v503_v21 = vpack.c.bf16 %v180_v18, %v178_v16  ;;  %v182_v23 = vld [vmem:[#allocation7 + $0x40] sm:$0xff]  ;;  %v184_v24 = vld [vmem:[#allocation7 + $0x50] sm:$0xff] }
  0x50   :  { %498 = vmatprep.subr.bf16.mxu1 %v497_v12  ;;  %v505_v22 = vpack.c.bf16 %v185_v20, %v183_v19  ;;  %v187_v25 = vld [vmem:[#allocation7 + $0x68] sm:$0xff]  ;;  %v189_v26 = vld [vmem:[#allocation7 + $0x78] sm:$0xff]  ;;  %v507_v27 = vpack.c.bf16 %v184_v24, %v182_v23  ;;  %v186_v29 = vld [vmem:[#allocation7 + $0x60] sm:$0xff] }
  0x51   :  { %500 = vmatpush1.bf16.msra.mxu1 %v499_v13  ;;  %456 = vmatmul.mubr.msk.f32.vlgmr.msra.gmra.mrb[0].mxu0 %vm97_vm0, %v80_v8  ;;  %v509_v28 = vpack.c.bf16 %v189_v26, %v187_v25  ;;  %v188_v30 = vld [vmem:[#allocation7 + $0x70] sm:$0xff]  ;;  %v191_v31 = vld [vmem:[#allocation7 + $0x88] sm:$0xff]  ;;  %v193_v32 = vld [vmem:[#allocation7 + $0x98] sm:$0xff] }
  0x52   :  { %502 = vmatprep.subr.bf16.mxu1 %v501_v17  ;;  %v511_v33 = vpack.c.bf16 %v188_v30, %v186_v29  ;;  %v513_v34 = vpack.c.bf16 %v193_v32, %v191_v31  ;;  %v190_v35 = vld [vmem:[#allocation7 + $0x80] sm:$0xff]  ;;  %v192_v36 = vld [vmem:[#allocation7 + $0x90] sm:$0xff]  ;;  %v195_v37 = vld [vmem:[#allocation7 + $0xa8] sm:$0xff] }
  0x53   :  { %v197_v38 = vld [vmem:[#allocation7 + $0xb8] sm:$0xff]  ;;  %v515_v39 = vpack.c.bf16 %v192_v36, %v190_v35  ;;  %v194_v41 = vld [vmem:[#allocation7 + $0xa0] sm:$0xff]  ;;  %v196_v42 = vld [vmem:[#allocation7 + $0xb0] sm:$0xff] }
  0x54   :  { %v517_v40 = vpack.c.bf16 %v197_v38, %v195_v37  ;;  %v199_v43 = vld [vmem:[#allocation7 + $0xc8] sm:$0xff]  ;;  %v201_v44 = vld [vmem:[#allocation7 + $0xd8] sm:$0xff]  ;;  %v519_v45 = vpack.c.bf16 %v196_v42, %v194_v41  ;;  %v198_v47 = vld [vmem:[#allocation7 + $0xc0] sm:$0xff] }
  0x55   :  { %504 = vmatpush1.bf16.msra.mxu1 %v503_v21  ;;  %v521_v46 = vpack.c.bf16 %v201_v44, %v199_v43  ;;  %v200_v48 = vld [vmem:[#allocation7 + $0xd0] sm:$0xff]  ;;  %v203_v49 = vld [vmem:[#allocation7 + $0xe8] sm:$0xff]  ;;  %v205_v50 = vld [vmem:[#allocation7 + $0xf8] sm:$0xff] }
  0x56   :  { %506 = vmatprep.subr.bf16.mxu1 %v505_v22  ;;  %v523_v51 = vpack.c.bf16 %v200_v48, %v198_v47  ;;  %v525_v52 = vpack.c.bf16 %v205_v50, %v203_v49  ;;  %v202_v53 = vld [vmem:[#allocation7 + $0xe0] sm:$0xff]  ;;  %v204_v54 = vld [vmem:[#allocation7 + $0xf0] sm:$0xff]  ;;  %v207_v55 = vld [vmem:[#allocation7 + $0x108] sm:$0xff] }
  0x57   :  { %v209_v56 = vld [vmem:[#allocation7 + $0x118] sm:$0xff]  ;;  %v527_v57 = vpack.c.bf16 %v204_v54, %v202_v53  ;;  %v206_v59 = vld [vmem:[#allocation7 + $0x100] sm:$0xff]  ;;  %v208_v60 = vld [vmem:[#allocation7 + $0x110] sm:$0xff] }
  0x58   :  { %v529_v58 = vpack.c.bf16 %v209_v56, %v207_v55  ;;  %v211_v61 = vld [vmem:[#allocation7 + $0x128] sm:$0xff]  ;;  %v213_v62 = vld [vmem:[#allocation7 + $0x138] sm:$0xff]  ;;  %v531_v63 = vpack.c.bf16 %v208_v60, %v206_v59  ;;  %v210_v1 = vld [vmem:[#allocation7 + $0x120] sm:$0xff] }
  0x59   :  { %508 = vmatpush1.bf16.msra.mxu1 %v507_v27  ;;  %v533_v0 = vpack.c.bf16 %v213_v62, %v211_v61  ;;  %v212_v2 = vld [vmem:[#allocation7 + $0x130] sm:$0xff]  ;;  %v215_v3 = vld [vmem:[#allocation7 + $0x148] sm:$0xff]  ;;  %v217_v4 = vld [vmem:[#allocation7 + $0x158] sm:$0xff] }
  0x5a   :  { %510 = vmatprep.subr.bf16.mxu1 %v509_v28  ;;  %v535_v5 = vpack.c.bf16 %v212_v2, %v210_v1  ;;  %v537_v6 = vpack.c.bf16 %v217_v4, %v215_v3  ;;  %v214_v7 = vld [vmem:[#allocation7 + $0x140] sm:$0xff]  ;;  %v216_v8 = vld [vmem:[#allocation7 + $0x150] sm:$0xff]  ;;  %v219_v9 = vld [vmem:[#allocation7 + $0x168] sm:$0xff] }
  0x5b   :  { %v221_v10 = vld [vmem:[#allocation7 + $0x178] sm:$0xff]  ;;  %v539_v11 = vpack.c.bf16 %v216_v8, %v214_v7  ;;  %v218_v13 = vld [vmem:[#allocation7 + $0x160] sm:$0xff]  ;;  %v220_v14 = vld [vmem:[#allocation7 + $0x170] sm:$0xff] }
  0x5c   :  { %v541_v12 = vpack.c.bf16 %v221_v10, %v219_v9  ;;  %v223_v15 = vld [vmem:[#allocation7 + $0x188] sm:$0xff]  ;;  %v225_v16 = vld [vmem:[#allocation7 + $0x198] sm:$0xff]  ;;  %v543_v17 = vpack.c.bf16 %v220_v14, %v218_v13  ;;  %v222_v19 = vld [vmem:[#allocation7 + $0x180] sm:$0xff] }
  0x5d   :  { %512 = vmatpush1.bf16.msra.mxu1 %v511_v33  ;;  %v545_v18 = vpack.c.bf16 %v225_v16, %v223_v15  ;;  %v224_v20 = vld [vmem:[#allocation7 + $0x190] sm:$0xff]  ;;  %v227_v21 = vld [vmem:[#allocation7 + $0x1a8] sm:$0xff]  ;;  %v229_v22 = vld [vmem:[#allocation7 + $0x1b8] sm:$0xff]  ;;  %v87_v15 = vlaneseq }
  0x5e   :  { %514 = vmatprep.subr.bf16.mxu1 %v513_v34  ;;  %v547_v23 = vpack.c.bf16 %v224_v20, %v222_v19  ;;  %v549_v24 = vpack.c.bf16 %v229_v22, %v227_v21  ;;  %v226_v25 = vld [vmem:[#allocation7 + $0x1a0] sm:$0xff]  ;;  %v228_v26 = vld [vmem:[#allocation7 + $0x1b0] sm:$0xff]  ;;  %v231_v27 = vld [vmem:[#allocation7 + $0x1c8] sm:$0xff] }
  0x5f   :  { %v233_v28 = vld [vmem:[#allocation7 + $0x1d8] sm:$0xff]  ;;  %v551_v29 = vpack.c.bf16 %v228_v26, %v226_v25  ;;  %v230_v31 = vld [vmem:[#allocation7 + $0x1c0] sm:$0xff]  ;;  %v232_v32 = vld [vmem:[#allocation7 + $0x1d0] sm:$0xff]  ;;  %v88_v16 = vshrl.u32 %v87_v15, 7 }
  0x60   :  { %v553_v30 = vpack.c.bf16 %v233_v28, %v231_v27  ;;  %v555_v33 = vpack.c.bf16 %v232_v32, %v230_v31  ;;  %v235_v34 = vld [vmem:[#allocation7 + $0x1e8] sm:$0xff]  ;;  %v237_v35 = vld [vmem:[#allocation7 + $0x1f8] sm:$0xff]  ;;  %v234_v37 = vld [vmem:[#allocation7 + $0x1e0] sm:$0xff] }
  0x61   :  { %516 = vmatpush1.bf16.msra.mxu1 %v515_v39  ;;  %v557_v36 = vpack.c.bf16 %v237_v35, %v235_v34  ;;  %v236_v38 = vld [vmem:[#allocation7 + $0x1f0] sm:$0xff]  ;;  %v340_v41 = vld [vmem:[#allocation8 + $0x88] sm:$0xff]  ;;  %v323_v42 = vld [vmem:[#allocation8] sm:$0xff]  ;;  %v93_v19 = vsub.s32 1, %v88_v16 }
  0x62   :  { %518 = vmatprep.subr.bf16.mxu1 %v517_v40  ;;  %v559_v39 = vpack.c.bf16 %v236_v38, %v234_v37  ;;  %v339_v40 = vld [vmem:[#allocation8 + $0x80] sm:$0xff]  ;;  %v324_v44 = vld [vmem:[#allocation8 + $0x8] sm:$0xff]  ;;  %v325_v49 = vld [vmem:[#allocation8 + $0x10] sm:$0xff] }
  0x63   :  { %v561_v43 = vpack.c.bf16 %v340_v41, %v339_v40  ;;  %v563_v47 = vpack.c.bf16 %v324_v44, %v323_v42  ;;  %v326_v50 = vld [vmem:[#allocation8 + $0x18] sm:$0xff]  ;;  %v327_v55 = vld [vmem:[#allocation8 + $0x20] sm:$0xff]  ;;  %v328_v56 = vld [vmem:[#allocation8 + $0x28] sm:$0xff] }
  0x64   :  { %v567_v53 = vpack.c.bf16 %v326_v50, %v325_v49  ;;  %v571_v59 = vpack.c.bf16 %v328_v56, %v327_v55  ;;  %v329_v61 = vld [vmem:[#allocation8 + $0x30] sm:$0xff]  ;;  %v330_v62 = vld [vmem:[#allocation8 + $0x38] sm:$0xff]  ;;  %v331_v3 = vld [vmem:[#allocation8 + $0x40] sm:$0xff]  ;;  %v433_v50 = vand.u32 127, %v87_v15 }
  0x65   :  { %520 = vmatpush1.bf16.msra.mxu1 %v519_v45  ;;  %v341_v45 = vld [vmem:[#allocation8 + $0x90] sm:$0xff]  ;;  %562 = vmatprep.subr.bf16.mxu0 %v561_v43  ;;  %v575_v1 = vpack.c.bf16 %v330_v62, %v329_v61  ;;  %v332_v4 = vld [vmem:[#allocation8 + $0x48] sm:$0xff]  ;;  %v334_v10 = vld [vmem:[#allocation8 + $0x58] sm:$0xff] }
  0x66   :  { %522 = vmatprep.subr.bf16.mxu1 %v521_v46  ;;  %v342_v46 = vld [vmem:[#allocation8 + $0x98] sm:$0xff]  ;;  %564 = vmatpush3.bf16.msra.mxu0 %v563_v47  ;;  %v579_v7 = vpack.c.bf16 %v332_v4, %v331_v3  ;;  %v333_v9 = vld [vmem:[#allocation8 + $0x50] sm:$0xff]  ;;  %v335_v28 = vld [vmem:[#allocation8 + $0x60] sm:$0xff]  ;;  %vm434_vm1 = vcmp.ge.s32.totalorder %v433_v50, 4 }
  0x67   :  { %v565_v48 = vpack.c.bf16 %v342_v46, %v341_v45  ;;  %v583_v13 = vpack.c.bf16 %v334_v10, %v333_v9  ;;  %v353_v31 = vld [vmem:[#allocation8 + $0xf0] sm:$0xff]  ;;  %v354_v32 = vld [vmem:[#allocation8 + $0xf8] sm:$0xff] }
  0x68   :  { %v337_v34 = vld [vmem:[#allocation8 + $0x70] sm:$0xff]  ;;  %v338_v35 = vld [vmem:[#allocation8 + $0x78] sm:$0xff] }
  0x69   :  { %524 = vmatpush1.bf16.msra.mxu1 %v523_v51  ;;  %v343_v51 = vld [vmem:[#allocation8 + $0xa0] sm:$0xff]  ;;  %566 = vmatprep.subr.bf16.mxu0 %v565_v48  ;;  %v238_v37 = vld [vmem:[%s850_s4] sm:$0x3]  ;;  %s730_s4 = smov [#allocation10]  }
  0x6a   :  { %526 = vmatprep.subr.bf16.mxu1 %v525_v52  ;;  %v344_v52 = vld [vmem:[#allocation8 + $0xa8] sm:$0xff]  ;;  %568 = vmatpush3.bf16.msra.mxu0 %v567_v53  ;;  %v457_v47 = vld [vmem:[%s852_s6] ss:$0 sm:$0xff]  ;;  %s445_s30 = sshll.u32 %s730_s4, 4  ;;  %s446_s30 = int_to_ptr.vmem [resolvable:$true] %s445_s30 }
  0x6b   :  { %v569_v54 = vpack.c.bf16 %v344_v52, %v343_v51  ;;  %s691_s8 = scalar_lea.vmem %s446_s30, 128  ;;  %p696_p5 = scmp.lt.s32.totalorder %s446_s30, %s446_s30 }
  0x6c   :  { %p692_p4 = scmp.ne.s32.totalorder %s446_s30, %s691_s8  ;;  %p697_p6 = scmp.lt.s32.totalorder %s691_s8, %s691_s8 }
  0x6d   :  { %528 = vmatpush1.bf16.msra.mxu1 %v527_v57  ;;  %v345_v57 = vld [vmem:[#allocation8 + $0xb0] sm:$0xff]  ;;  %570 = vmatprep.subr.bf16.mxu0 %v569_v54 }
  0x6e   :  { %530 = vmatprep.subr.bf16.mxu1 %v529_v58  ;;  %v346_v58 = vld [vmem:[#allocation8 + $0xb8] sm:$0xff]  ;;  %572 = vmatpush3.bf16.msra.mxu0 %v571_v59  ;;  %p698_p7 = por %p697_p6, %p696_p5 }
  0x6f   :  { %v573_v60 = vpack.c.bf16 %v346_v58, %v345_v57 }
  0x70   :  { %p699_p8 = pnand %p698_p7, %p692_p4 }
  0x71   :  { %532 = vmatpush1.bf16.msra.mxu1 %v531_v63  ;;  %v347_v63 = vld [vmem:[#allocation8 + $0xc0] sm:$0xff]  ;;  %574 = vmatprep.subr.bf16.mxu0 %v573_v60 }
  0x72   :  { %534 = vmatprep.subr.bf16.mxu1 %v533_v0  ;;  %v348_v0 = vld [vmem:[#allocation8 + $0xc8] sm:$0xff]  ;;  %576 = vmatpush3.bf16.msra.mxu0 %v575_v1 }
  0x73   :  { %v577_v2 = vpack.c.bf16 %v348_v0, %v347_v63 }
  0x75   :  { %536 = vmatpush1.bf16.msra.mxu1 %v535_v5  ;;  %v349_v5 = vld [vmem:[#allocation8 + $0xd0] sm:$0xff]  ;;  %578 = vmatprep.subr.bf16.mxu0 %v577_v2 }
  0x76   :  { %538 = vmatprep.subr.bf16.mxu1 %v537_v6  ;;  %v350_v6 = vld [vmem:[#allocation8 + $0xd8] sm:$0xff]  ;;  %580 = vmatpush3.bf16.msra.mxu0 %v579_v7 }
  0x77   :  { %v581_v8 = vpack.c.bf16 %v350_v6, %v349_v5 }
  0x79   :  { %540 = vmatpush1.bf16.msra.mxu1 %v539_v11  ;;  %v351_v11 = vld [vmem:[#allocation8 + $0xe0] sm:$0xff]  ;;  %582 = vmatprep.subr.bf16.mxu0 %v581_v8 }
  0x7a   :  { %542 = vmatprep.subr.bf16.mxu1 %v541_v12  ;;  %v352_v12 = vld [vmem:[#allocation8 + $0xe8] sm:$0xff]  ;;  %584 = vmatpush3.bf16.msra.mxu0 %v583_v13 }
  0x7b   :  { %v585_v14 = vpack.c.bf16 %v352_v12, %v351_v11 }
  0x7d   :  { %544 = vmatpush1.bf16.msra.mxu1 %v543_v17  ;;  %586 = vmatprep.subr.bf16.mxu0 %v585_v14  ;;  %v89_v17 = vsub.s32 0, %v88_v16 }
  0x7e   :  { %546 = vmatprep.subr.bf16.mxu1 %v545_v18  ;;  %v85_v18 = vld [vmem:[%s848_s2] sm:$0x3] }
  0x7f   :  { %v90_v20 = vrot.slane %v85_v18, %v89_v17  ;;  %v94_v21 = vrot.slane %v85_v18, %v93_v19  ;;  %v243_v38 = vrot.slane %v238_v37, %v89_v17 }
  0x81   :  { %548 = vmatpush1.bf16.msra.mxu1 %v547_v23 }
  0x82   :  { %550 = vmatprep.subr.bf16.mxu1 %v549_v24 }
  0x85   :  { %552 = vmatpush1.bf16.msra.mxu1 %v551_v29  ;;  %v336_v29 = vld [vmem:[#allocation8 + $0x68] sm:$0xff] }
  0x86   :  { %554 = vmatprep.subr.bf16.mxu1 %v553_v30  ;;  %v587_v30 = vpack.c.bf16 %v336_v29, %v335_v28 }
  0x88   :  { %588 = vmatpush3.bf16.msra.mxu0 %v587_v30 }
  0x89   :  { %556 = vmatpush1.bf16.msra.mxu1 %v555_v33  ;;  %v589_v33 = vpack.c.bf16 %v354_v32, %v353_v31 }
  0x8a   :  { %558 = vmatprep.subr.bf16.mxu1 %v557_v36  ;;  %v591_v36 = vpack.c.bf16 %v338_v35, %v337_v34 }
  0x8b   :  { %590 = vmatprep.subr.bf16.mxu0 %v589_v33 }
  0x8c   :  { %592 = vmatpush3.bf16.msra.mxu0 %v591_v36 }
  0x8d   :  { %560 = vmatpush1.bf16.msra.mxu1 %v559_v39  ;;  %v247_v39 = vrot.slane %v238_v37, %v93_v19 }
 0x124   :  { %v167_v22 = vpop.f32.mrb[0].mxu0 }
 0x125   :  { %v168_v23 = vadd.f32 %v167_v22, %v90_v20  ;;  %v169_v24 = vpop.f32.mrb[1].mxu0 }
 0x126   :  { %v170_v25 = vadd.f32 %v169_v24, %v94_v21 }
 0x127   :  { %v172_v27 = vmax.f32 %v168_v23, 0.0 }
 0x128   :  { %v173_v26 = vmax.f32 %v170_v25, 0.0 }
 0x12a   :  { %314 = vmatprep.mubr.f32.mxu1 %v173_v26 }
 0x12b   :  { %315 = vmatmul.mubr.f32.vlgmr.msra.gmra.mrb[0].mxu1 %v172_v27 }
 0x1fe   :  { %v316_v40 = vpop.f32.mrb[0].mxu1 }
 0x1ff   :  { %v317_v41 = vadd.f32 %v316_v40, %v243_v38  ;;  %v318_v42 = vpop.f32.mrb[1].mxu1 }
 0x200   :  { %v319_v43 = vadd.f32 %v318_v42, %v247_v39 }
 0x201   :  { %v321_v45 = vmax.f32 %v317_v41, 0.0 }
 0x202   :  { %v322_v44 = vmax.f32 %v319_v43, 0.0 }
 0x204   :  { %426 = vmatprep.mubr.f32.mxu0 %v322_v44 }
 0x205   :  { %427 = vmatmul.mubr.f32.vlgmr.msra.gmra.mrb[2].mxu0 %v321_v45 }
 0x2d8   :  { %v490_v46 = vpop.f32.mrb[2].mxu0 }
 0x2d9   :  { %v491_v48 = vpop.f32.mrb[3].mxu0 }
 0x2da   :  { %v492_v49 = vadd.f32 %v491_v48, %v490_v46 }
 0x2dc   :  { %v429_v51 = vadd.f32 %v492_v49, %v457_v47 }
 0x2de   :  { %v435_v52 = vmax.f32 %v429_v51, -20.0 }
 0x2e0   :  { %v436_v53 = vmin.f32 %v435_v52, 2.0 }
 0x2e2   :  { %v437_v54 = vsel %vm434_vm1, %v436_v53, %v429_v51 }
 0x2e3   :  { %438 = vst [vmem:[#allocation10] sm:$0xff] %v437_v54 }
 0x2e4   :  { %702 = shalt.err (!%p699_p8)
}
 0x2e5   :  { %s703_s10 = scalar_lea.hbm %s853_s7, 128 }
 0x2e6   :  { %p704_p9 = scmp.ne.s32.totalorder %s853_s7, %s703_s10  ;;  %p707_p10 = scmp.lt.u32.totalorder %s703_s10, %s853_s7 }
 0x2e8   :  { %p709_p11 = pnand %p707_p10, %p704_p9 }
 0x2ea   :  { %712 = shalt.err (!%p709_p11)
}
 0x2eb   :  { %448 = dma.vmem_to_hbm [thread:$0]  %s446_s30, 128, %s853_s7, [#allocation4]  }
 0x2ec   :  { %719 = dma.done.wait [#allocation4], 128  }
 0x2ed   :  { %720 = vsyncadd [#allocation4], 4294967168 }
 0x2ee   :  { %452 = vsyncpa [#allocation3], 1 }
 0x2ef   :  { %453 = vsyncpa [#allocation6], 1 }
 0x2f0   :  { %454 = vsyncpa [#allocation9], 1 }
 0x2f1   :  { %455 = vsyncpa [#allocation4], 1 }

</bundles_post_ra>
